<compile_context>
chip_gen: v5e
topology: v5e:2x2
jax: 0.10.0
libtpu: 0.0.40
codegen_flags: <defaults>
</compile_context>

<pallas_src>
import jax
import jax.numpy as jnp
from jax.experimental import pallas as pl
from jax.experimental.pallas import tpu as pltpu


def _round_up(x, m):
    return ((x + m - 1) // m) * m


def _make_gcn_kernel(batch, reorder):
    """Kernel factory: `batch` and `reorder` are static (baked at trace time)."""

    def gcn_kernel(x_ref, w_ref, att_ref, b_ref, o_ref):
        # x_ref:   (B, node_p, in_p)   padded node features
        # w_ref:   (in_p, out_p)
        # att_ref: (node_p, node_p)
        # b_ref:   (1, out_p)
        # o_ref:   (B, node_p, out_p)
        w = w_ref[...]
        att = att_ref[...]
        bias = b_ref[...]
        # Single kernel invocation; B is tiny and static -> unrolled loop
        # (no per-grid-step DMA/setup overhead, invariants loaded once).
        for b in range(batch):
            xb = x_ref[b]  # (node_p, in_p)
            if reorder:
                # (att @ x) @ W : cheaper when in_f <= out_f
                z = jnp.dot(att, xb, preferred_element_type=jnp.float32)
                out = jnp.dot(z, w, preferred_element_type=jnp.float32)
            else:
                # att @ (x @ W)
                s = jnp.dot(xb, w, preferred_element_type=jnp.float32)
                out = jnp.dot(att, s, preferred_element_type=jnp.float32)
            o_ref[b] = out + bias

    return gcn_kernel


def graph_convolution(x, weight, att, bias):
    """x: (B, node_n, in_features) -> (B, node_n, out_features), float32."""
    x = x.astype(jnp.float32)
    weight = weight.astype(jnp.float32)
    att = att.astype(jnp.float32)
    bias = bias.astype(jnp.float32)

    B, node_n, in_f = x.shape
    out_f = weight.shape[1]

    # Lane/sublane-dense padded sizes (zeros do not change the result).
    node_p = _round_up(node_n, 8)    # f32 sublane multiple
    in_p = _round_up(in_f, 128)      # lane multiple
    out_p = _round_up(out_f, 128)    # lane multiple -> unmasked output stores

    x_p = jnp.pad(x, ((0, 0), (0, node_p - node_n), (0, in_p - in_f)))
    w_p = jnp.pad(weight, ((0, in_p - in_f), (0, out_p - out_f)))
    att_p = jnp.pad(att, ((0, node_p - node_n), (0, node_p - node_n)))
    bias_p = jnp.pad(bias.reshape(1, -1), ((0, 0), (0, out_p - out_f)))

    # Algebraic reorder: (att @ x) @ W when in_f <= out_f (fewer MXU passes).
    reorder = in_f <= out_f

    if reorder:
        flops_per_b = 2 * node_p * node_p * in_p + 2 * node_p * in_p * out_p
    else:
        flops_per_b = 2 * node_p * in_p * out_p + 2 * node_p * node_p * out_p
    bytes_accessed = 4 * (
        x_p.size + w_p.size + att_p.size + bias_p.size + B * node_p * out_p
    )
    cost = pl.CostEstimate(
        flops=int(B * flops_per_b),
        transcendentals=0,
        bytes_accessed=int(bytes_accessed),
    )

    vmem_spec = pl.BlockSpec(memory_space=pltpu.MemorySpace.VMEM)

    out_padded = pl.pallas_call(
        _make_gcn_kernel(B, reorder),
        out_shape=jax.ShapeDtypeStruct((B, node_p, out_p), jnp.float32),
        in_specs=[vmem_spec, vmem_spec, vmem_spec, vmem_spec],
        out_specs=vmem_spec,
        cost_estimate=cost,
    )(x_p, w_p, att_p, bias_p)

    # Slice away the zero padding.
    return out_padded[:, :node_n, :out_f]


if __name__ == "__main__":
    # Module config (small, consistent with the PyTorch __init__)
    in_features = 16
    out_features = 32
    node_n = 20
    batch = 2

    key = jax.random.PRNGKey(0)
    k_x, k_w, k_a = jax.random.split(key, 3)

    # Deterministic parameter init mirroring torch.normal(0, 0.01, ...) / zeros
    weight = 0.01 * jax.random.normal(k_w, (in_features, out_features), jnp.float32)
    att = 0.01 * jax.random.normal(k_a, (node_n, node_n), jnp.float32)
    bias = jnp.zeros((out_features,), jnp.float32)

    # Example input
    x = jax.random.normal(k_x, (batch, node_n, in_features), jnp.float32)

    out = graph_convolution(x, weight, att, bias)
    out = jax.block_until_ready(out)

    # Reference check in plain JAX (same semantics as the PyTorch forward)
    ref = jnp.einsum("nm,bmf->bnf", att, x @ weight) + bias
    assert out.shape == (batch, node_n, out_features)
    assert jnp.allclose(out, ref, atol=1e-5, rtol=1e-5)

    print("KERNEL_OK")
</pallas_src>

<mosaic_0001>
module attributes {stable_mosaic.version = 11 : i64} {
  func.func @gcn_kernel(%arg0: memref<2x24x128xf32, #tpu.memory_space<vmem>>, %arg1: memref<128x128xf32, #tpu.memory_space<vmem>>, %arg2: memref<24x24xf32, #tpu.memory_space<vmem>>, %arg3: memref<1x128xf32, #tpu.memory_space<vmem>>, %arg4: memref<2x24x128xf32, #tpu.memory_space<vmem>>) attributes {dimension_semantics = [], scalar_prefetch = 0 : i64, scratch_operands = 0 : i64, tpu.core_type = #tpu.core_type<tc>} {
    %c0 = arith.constant 0 : index
    %c0_0 = arith.constant 0 : index
    %0 = vector.load %arg1[%c0, %c0_0] : memref<128x128xf32, #tpu.memory_space<vmem>>, vector<128x128xf32>
    %c0_1 = arith.constant 0 : index
    %c0_2 = arith.constant 0 : index
    %1 = vector.load %arg2[%c0_1, %c0_2] : memref<24x24xf32, #tpu.memory_space<vmem>>, vector<24x24xf32>
    %c0_3 = arith.constant 0 : index
    %c0_4 = arith.constant 0 : index
    %2 = vector.load %arg3[%c0_3, %c0_4] : memref<1x128xf32, #tpu.memory_space<vmem>>, vector<1x128xf32>
    %c0_5 = arith.constant 0 : index
    %c0_6 = arith.constant 0 : index
    %c0_7 = arith.constant 0 : index
    %3 = vector.load %arg0[%c0_5, %c0_6, %c0_7] : memref<2x24x128xf32, #tpu.memory_space<vmem>>, vector<1x24x128xf32>
    %4 = vector.shape_cast %3 : vector<1x24x128xf32> to vector<24x128xf32>
    %cst = arith.constant dense<0.000000e+00> : vector<24x128xf32>
    %5 = tpu.matmul %1, %4, %cst {dimension_numbers = #tpu.dot_dimension_numbers<[1], [0], [0], [1], [0, 0, 1, 1], [], []>} : vector<24x24xf32>, vector<24x128xf32>, vector<24x128xf32> -> vector<24x128xf32>
    %cst_8 = arith.constant dense<0.000000e+00> : vector<24x128xf32>
    %6 = tpu.matmul %5, %0, %cst_8 {dimension_numbers = #tpu.dot_dimension_numbers<[1], [0], [0], [1], [0, 0, 1, 1], [], []>} : vector<24x128xf32>, vector<128x128xf32>, vector<24x128xf32> -> vector<24x128xf32>
    %7 = vector.broadcast %2 : vector<1x128xf32> to vector<24x128xf32>
    %8 = arith.addf %6, %7 : vector<24x128xf32>
    %c0_9 = arith.constant 0 : index
    %c0_10 = arith.constant 0 : index
    %c0_11 = arith.constant 0 : index
    %9 = vector.load %arg4[%c0_9, %c0_10, %c0_11] : memref<2x24x128xf32, #tpu.memory_space<vmem>>, vector<1x24x128xf32>
    %10 = vector.shape_cast %9 : vector<1x24x128xf32> to vector<24x128xf32>
    %11 = vector.shape_cast %8 : vector<24x128xf32> to vector<1x24x128xf32>
    tpu.vector_store %arg4[%c0_9, %c0_10, %c0_11], %11 {strides = array<i32>} : memref<2x24x128xf32, #tpu.memory_space<vmem>>, vector<1x24x128xf32>,
    %c1 = arith.constant 1 : index
    %c0_12 = arith.constant 0 : index
    %c0_13 = arith.constant 0 : index
    %12 = vector.load %arg0[%c1, %c0_12, %c0_13] : memref<2x24x128xf32, #tpu.memory_space<vmem>>, vector<1x24x128xf32>
    %13 = vector.shape_cast %12 : vector<1x24x128xf32> to vector<24x128xf32>
    %cst_14 = arith.constant dense<0.000000e+00> : vector<24x128xf32>
    %14 = tpu.matmul %1, %13, %cst_14 {dimension_numbers = #tpu.dot_dimension_numbers<[1], [0], [0], [1], [0, 0, 1, 1], [], []>} : vector<24x24xf32>, vector<24x128xf32>, vector<24x128xf32> -> vector<24x128xf32>
    %cst_15 = arith.constant dense<0.000000e+00> : vector<24x128xf32>
    %15 = tpu.matmul %14, %0, %cst_15 {dimension_numbers = #tpu.dot_dimension_numbers<[1], [0], [0], [1], [0, 0, 1, 1], [], []>} : vector<24x128xf32>, vector<128x128xf32>, vector<24x128xf32> -> vector<24x128xf32>
    %16 = vector.broadcast %2 : vector<1x128xf32> to vector<24x128xf32>
    %17 = arith.addf %15, %16 : vector<24x128xf32>
    %c1_16 = arith.constant 1 : index
    %c0_17 = arith.constant 0 : index
    %c0_18 = arith.constant 0 : index
    %18 = vector.load %arg4[%c1_16, %c0_17, %c0_18] : memref<2x24x128xf32, #tpu.memory_space<vmem>>, vector<1x24x128xf32>
    %19 = vector.shape_cast %18 : vector<1x24x128xf32> to vector<24x128xf32>
    %20 = vector.shape_cast %17 : vector<24x128xf32> to vector<1x24x128xf32>
    tpu.vector_store %arg4[%c1_16, %c0_17, %c0_18], %20 {strides = array<i32>} : memref<2x24x128xf32, #tpu.memory_space<vmem>>, vector<1x24x128xf32>,
    return
  }
}

</mosaic_0001>

<bundles_post_ra>
// kernel: tpu_custom_call.1
= control target key start
LH: loop header
LB: loop body
LE: loop exit
PB: predicated region body
PF: predicated region fallthrough
CT: control target
= control target key end

     0   :  { %9 = vsyncpa [#allocation3], 0  ;;  %s447_s0 = inlined_call_operand.hbm [shape: f32[2,24,128], index: 0, kind: input, shape index: {}]   ;;  %s448_s1 = inlined_call_operand.hbm [shape: f32[128,128], index: 1, kind: input, shape index: {}]   ;;  %s449_s2 = inlined_call_operand.hbm [shape: f32[24,24], index: 2, kind: input, shape index: {}]   ;;  %s450_s3 = inlined_call_operand.vmem [shape: f32[1,128], index: 3, kind: input, shape index: {}]   ;;  %s451_s4 = inlined_call_operand.hbm [shape: f32[2,24,128], index: 4, kind: output, shape index: {}]  }
   0x1   :  { %10 = vsyncpa [#allocation6], 0 }
   0x2   :  { %11 = vsyncpa [#allocation4], 0  ;;  %s29_s17 = sshll.u32 %s448_s1, 4  ;;  %s383_s18 = smov [#allocation5]   ;;  %s30_s17 = int_to_ptr.hbm [resolvable:$true] %s29_s17 }
   0x3   :  { %s31_s19 = sshll.u32 %s383_s18, 4  ;;  %s16_s22 = sshll.u32 %s447_s0, 4  ;;  %s32_s19 = int_to_ptr.vmem [resolvable:$true] %s31_s19  ;;  %s17_s22 = int_to_ptr.hbm [resolvable:$true] %s16_s22 }
   0x4   :  { %s384_s23 = smov 128   ;;  %s385_s24 = smov 8  }
   0x5   :  { %37 = dma.hbm_to_vmem [thread:$0]  %s30_s17, 2048, %s32_s19, [#allocation6], %s384_s23, %s384_s23, %s385_s24  }
   0x6   :  { %s386_s25 = smov [#allocation2]   ;;  %s42_s1 = sshll.u32 %s449_s2, 4  ;;  %s43_s1 = int_to_ptr.hbm [resolvable:$true] %s42_s1 }
   0x7   :  { %s18_s26 = sshll.u32 %s386_s25, 4  ;;  %s387_s0 = smov [#allocation7]   ;;  %s19_s26 = int_to_ptr.vmem [resolvable:$true] %s18_s26 }
   0x8   :  { %24 = dma.hbm_to_vmem [thread:$0]  %s17_s22, 768, %s19_s26, [#allocation3], %s384_s23, %s384_s23, %s385_s24  }
   0x9   :  { %s44_s29 = sshll.u32 %s387_s0, 4  ;;  %s45_s29 = int_to_ptr.vmem [resolvable:$true] %s44_s29 }
   0xa   :  { %50 = dma.hbm_to_vmem [thread:$0]  %s43_s1, 384, %s45_s29, [#allocation6], %s384_s23, %s384_s23, %s385_s24  }
   0xb   :  { %377 = dma.done.wait [#allocation3], 768  }
   0xc   :  { %378 = vsyncadd [#allocation3], 4294966528 }
   0xd   :  { %379 = dma.done.wait [#allocation6], 2432  }
   0xe   :  { %380 = vsyncadd [#allocation6], 4294964864  ;;  %v159_v0 = vld [vmem:[#allocation2 + $0x28] sm:$0xff]  ;;  %v158_v1 = vld [vmem:[#allocation2 + $0x20] sm:$0xff]  ;;  %vm88_vm0 = vcmask 195584   ;;  %s388_s5 = smov [#allocation8]  }
   0xf   :  { %173 = vmatpush.msra.mxu2 %v159_v0  ;;  %v87_v2 = vld [vmem:[#allocation2 + $0x10] sm:$0xff]  ;;  %v157_v3 = vld [vmem:[#allocation2 + $0x18] sm:$0xff]  ;;  %v86_v4 = vld [vmem:[#allocation2 + $0x8] sm:$0xff]  ;;  %s220_s6 = sshll.u32 %s388_s5, 4  ;;  %s221_s6 = int_to_ptr.vmem [resolvable:$true] %s220_s6 }
  0x10   :  { %111 = vmatpush.msra.mxu0 %v87_v2  ;;  %v81_v5 = vld [vmem:[#allocation7] sm:$0xff]  ;;  %v85_v6 = vld [vmem:[#allocation2] sm:$0xff]  ;;  %v80_v7 = vld [vmem:[#allocation5 + $0x78] sm:$0xff] }
  0x11   :  { %174 = vmatpush.msra.mxu2 %v158_v1  ;;  %258 = vmatpush.msra.mxu3 %v80_v7  ;;  %v79_v8 = vld [vmem:[#allocation5 + $0x70] sm:$0xff]  ;;  %v78_v9 = vld [vmem:[#allocation5 + $0x68] sm:$0xff]  ;;  %v77_v10 = vld [vmem:[#allocation5 + $0x60] sm:$0xff] }
  0x12   :  { %112 = vmatpush.msra.mxu0 %v86_v4  ;;  %242 = vmatpush.msra.mxu1 %v80_v7  ;;  %v82_v11 = vld [vmem:[#allocation7 + $0x8] sm:$0xff]  ;;  %v76_v12 = vld [vmem:[#allocation5 + $0x58] sm:$0xff]  ;;  %v75_v13 = vld [vmem:[#allocation5 + $0x50] sm:$0xff] }
  0x13   :  { %175 = vmatpush.msra.mxu2 %v157_v3  ;;  %259 = vmatpush.msra.mxu3 %v79_v8  ;;  %v74_v14 = vld [vmem:[#allocation5 + $0x48] sm:$0xff]  ;;  %v73_v15 = vld [vmem:[#allocation5 + $0x40] sm:$0xff]  ;;  %v83_v16 = vld [vmem:[#allocation7 + $0x10] sm:$0xff] }
  0x14   :  { %239 = vmatmul.msk.f32.vlgmr.msra.gmra.mxu2 %vm88_vm0, %v81_v5  ;;  %113 = vmatpush.msra.mxu0 %v85_v6  ;;  %v72_v17 = vld [vmem:[#allocation5 + $0x38] sm:$0xff]  ;;  %v71_v18 = vld [vmem:[#allocation5 + $0x30] sm:$0xff]  ;;  %v70_v19 = vld [vmem:[#allocation5 + $0x28] sm:$0xff] }
  0x15   :  { %236 = vmatmul.msk.f32.vlgmr.msra.gmra.mxu0 %vm88_vm0, %v81_v5  ;;  %186 = vmatpush.msrb.mxu2 %v80_v7  ;;  %v69_v20 = vld [vmem:[#allocation5 + $0x20] sm:$0xff]  ;;  %v68_v21 = vld [vmem:[#allocation5 + $0x18] sm:$0xff]  ;;  %v67_v22 = vld [vmem:[#allocation5 + $0x10] sm:$0xff] }
  0x16   :  { %127 = vmatpush.msrb.mxu0 %v80_v7  ;;  %243 = vmatpush.msra.mxu1 %v79_v8  ;;  %v66_v23 = vld [vmem:[#allocation5 + $0x8] sm:$0xff]  ;;  %v65_v24 = vld [vmem:[#allocation5] sm:$0xff]  ;;  %v280_v31 = vld [vmem:[%s450_s3] ss:$0 sm:$0xff]  ;;  %s222_s3 = sshll.u32 %s451_s4, 4  ;;  %s223_s3 = int_to_ptr.hbm [resolvable:$true] %s222_s3 }
  0x17   :  { %187 = vmatpush.msrb.mxu2 %v79_v8  ;;  %260 = vmatpush.msra.mxu3 %v78_v9 }
  0x18   :  { %128 = vmatpush.msrb.mxu0 %v79_v8  ;;  %244 = vmatpush.msra.mxu1 %v78_v9 }
  0x19   :  { %188 = vmatpush.msrb.mxu2 %v78_v9  ;;  %261 = vmatpush.msra.mxu3 %v77_v10 }
  0x1a   :  { %129 = vmatpush.msrb.mxu0 %v78_v9  ;;  %245 = vmatpush.msra.mxu1 %v77_v10 }
  0x1b   :  { %189 = vmatpush.msrb.mxu2 %v77_v10  ;;  %262 = vmatpush.msra.mxu3 %v76_v12 }
  0x1c   :  { %240 = vmatmul.msk.f32.gmra.mxu2 %vm88_vm0, %v82_v11  ;;  %130 = vmatpush.msrb.mxu0 %v77_v10 }
  0x1d   :  { %237 = vmatmul.msk.f32.gmra.mxu0 %vm88_vm0, %v82_v11  ;;  %190 = vmatpush.msrb.mxu2 %v76_v12 }
  0x1e   :  { %131 = vmatpush.msrb.mxu0 %v76_v12  ;;  %246 = vmatpush.msra.mxu1 %v76_v12 }
  0x1f   :  { %191 = vmatpush.msrb.mxu2 %v75_v13  ;;  %263 = vmatpush.msra.mxu3 %v75_v13 }
  0x20   :  { %132 = vmatpush.msrb.mxu0 %v75_v13  ;;  %247 = vmatpush.msra.mxu1 %v75_v13 }
  0x21   :  { %192 = vmatpush.msrb.mxu2 %v74_v14  ;;  %264 = vmatpush.msra.mxu3 %v74_v14 }
  0x22   :  { %133 = vmatpush.msrb.mxu0 %v74_v14  ;;  %248 = vmatpush.msra.mxu1 %v74_v14 }
  0x23   :  { %193 = vmatpush.msrb.mxu2 %v73_v15  ;;  %265 = vmatpush.msra.mxu3 %v73_v15 }
  0x24   :  { %241 = vmatmul.msk.f32.gmra.mxu2 %vm88_vm0, %v83_v16  ;;  %134 = vmatpush.msrb.mxu0 %v73_v15 }
  0x25   :  { %238 = vmatmul.msk.f32.gmra.mxu0 %vm88_vm0, %v83_v16  ;;  %194 = vmatpush.msrb.mxu2 %v72_v17 }
  0x26   :  { %135 = vmatpush.msrb.mxu0 %v72_v17  ;;  %249 = vmatpush.msra.mxu1 %v73_v15 }
  0x27   :  { %195 = vmatpush.msrb.mxu2 %v71_v18  ;;  %266 = vmatpush.msra.mxu3 %v72_v17 }
  0x28   :  { %136 = vmatpush.msrb.mxu0 %v71_v18  ;;  %250 = vmatpush.msra.mxu1 %v72_v17 }
  0x29   :  { %196 = vmatpush.msrb.mxu2 %v70_v19  ;;  %267 = vmatpush.msra.mxu3 %v71_v18 }
  0x2a   :  { %137 = vmatpush.msrb.mxu0 %v70_v19  ;;  %251 = vmatpush.msra.mxu1 %v71_v18 }
  0x2b   :  { %197 = vmatpush.msrb.mxu2 %v69_v20  ;;  %268 = vmatpush.msra.mxu3 %v70_v19 }
  0x2c   :  { %138 = vmatpush.msrb.mxu0 %v69_v20  ;;  %252 = vmatpush.msra.mxu1 %v70_v19 }
  0x2d   :  { %198 = vmatpush.msrb.mxu2 %v68_v21  ;;  %269 = vmatpush.msra.mxu3 %v69_v20 }
  0x2e   :  { %139 = vmatpush.msrb.mxu0 %v68_v21  ;;  %253 = vmatpush.msra.mxu1 %v69_v20 }
  0x2f   :  { %199 = vmatpush.msrb.mxu2 %v67_v22  ;;  %270 = vmatpush.msra.mxu3 %v68_v21 }
  0x30   :  { %140 = vmatpush.msrb.mxu0 %v67_v22  ;;  %254 = vmatpush.msra.mxu1 %v68_v21 }
  0x31   :  { %200 = vmatpush.msrb.mxu2 %v66_v23  ;;  %271 = vmatpush.msra.mxu3 %v67_v22 }
  0x32   :  { %141 = vmatpush.msrb.mxu0 %v66_v23  ;;  %255 = vmatpush.msra.mxu1 %v67_v22 }
  0x33   :  { %272 = vmatpush.msra.mxu3 %v66_v23  ;;  %201 = vmatpush.msrb.mxu2 %v65_v24 }
  0x34   :  { %256 = vmatpush.msra.mxu1 %v66_v23  ;;  %142 = vmatpush.msrb.mxu0 %v65_v24 }
  0x35   :  { %273 = vmatpush.msra.mxu3 %v65_v24 }
  0x36   :  { %257 = vmatpush.msra.mxu1 %v65_v24 }
  0x92   :  { %v115_v25 = vpop.f32.mrf.mxu0 }
  0x93   :  { %143 = vmatmul.f32.vlgmr.msrb.gmra.mxu0 %v115_v25 }
  0x97   :  { %v177_v26 = vpop.f32.mrf.mxu2 }
  0x98   :  { %202 = vmatmul.f32.vlgmr.msrb.gmra.mxu2 %v177_v26 }
  0x9a   :  { %v118_v27 = vpop.f32.mrf.mxu0 }
  0x9b   :  { %146 = vmatmul.f32.vlgmr.msra.gmra.mxu1 %v118_v27 }
  0x9f   :  { %v180_v28 = vpop.f32.mrf.mxu2 }
  0xa0   :  { %205 = vmatmul.f32.vlgmr.msra.gmra.mxu3 %v180_v28 }
  0xa2   :  { %v121_v29 = vpop.f32.mrf.mxu0 }
  0xa3   :  { %149 = vmatmul.f32.gmra.mxu1 %v121_v29 }
  0xa7   :  { %v183_v30 = vpop.f32.mrf.mxu2 }
  0xa8   :  { %208 = vmatmul.f32.gmra.mxu3 %v183_v30 }
 0x110   :  { %v144_v32 = vpop.f32.mrf.mxu0 }
 0x111   :  { %v145_v33 = vadd.f32 %v280_v31, %v144_v32 }
 0x113   :  { %153 = vst [vmem:[#allocation8] sm:$0xff] %v145_v33 }
 0x118   :  { %v147_v34 = vpop.f32.mrf.mxu1 }
 0x119   :  { %v148_v35 = vadd.f32 %v280_v31, %v147_v34 }
 0x11b   :  { %v203_v36 = vpop.f32.mrf.mxu2  ;;  %154 = vst [vmem:[#allocation8 + $0x8] sm:$0xff] %v148_v35 }
 0x11c   :  { %v204_v37 = vadd.f32 %v280_v31, %v203_v36 }
 0x11e   :  { %213 = vst [vmem:[#allocation8 + $0x18] sm:$0xff] %v204_v37 }
 0x120   :  { %v150_v38 = vpop.f32.mrf.mxu1 }
 0x121   :  { %v151_v39 = vadd.f32 %v280_v31, %v150_v38 }
 0x123   :  { %v206_v40 = vpop.f32.mrf.mxu3  ;;  %155 = vst [vmem:[#allocation8 + $0x10] sm:$0xff] %v151_v39 }
 0x124   :  { %v207_v41 = vadd.f32 %v280_v31, %v206_v40 }
 0x126   :  { %214 = vst [vmem:[#allocation8 + $0x20] sm:$0xff] %v207_v41 }
 0x12b   :  { %v209_v42 = vpop.f32.mrf.mxu3 }
 0x12c   :  { %v210_v43 = vadd.f32 %v280_v31, %v209_v42 }
 0x12e   :  { %215 = vst [vmem:[#allocation8 + $0x28] sm:$0xff] %v210_v43 }
 0x12f   :  { %228 = dma.vmem_to_hbm [thread:$0]  %s221_s6, 768, %s223_s3, [#allocation4], %s384_s23, %s384_s23, %s385_s24  }
 0x130   :  { %381 = dma.done.wait [#allocation4], 768  }
 0x131   :  { %382 = vsyncadd [#allocation4], 4294966528 }
 0x132   :  { %233 = vsyncpa [#allocation3], 1 }
 0x133   :  { %234 = vsyncpa [#allocation6], 1 }
 0x134   :  { %235 = vsyncpa [#allocation4], 1 }

</bundles_post_ra>
